<compile_context>
chip_gen: v7x
topology: tpu7x:2x2x1
jax: 0.10.0
libtpu: 0.0.40
codegen_flags: <defaults>
</compile_context>

<pallas_src>
import functools

import jax
import jax.numpy as jnp
from jax.experimental import pallas as pl
from jax.experimental.pallas import tpu as pltpu


def _round_up(x, m):
    return (x + m - 1) // m * m


def _pick_tiles(B, Din, Dout):
    """Pad shapes to TPU-friendly sizes and pick conservative (v7x-safe) tiles."""
    b_p = _round_up(B, 8)          # sublane alignment
    din_p = _round_up(Din, 128)    # lane alignment for the contraction dim
    dout_p = _round_up(Dout, 128)  # lane-dense output stores

    tm = 256 if b_p >= 256 else b_p
    tn = 256 if dout_p >= 256 else dout_p
    tk = 512 if din_p >= 512 else din_p

    b_p = _round_up(b_p, tm)
    dout_p = _round_up(dout_p, tn)
    din_p = _round_up(din_p, tk)
    return b_p, din_p, dout_p, tm, tn, tk


def _logreg_kernel(x_ref, w_ref, b_ref, o_ref, acc_ref, *, apply_sigmoid):
    # x_ref : (tm, tk)  bf16  VMEM
    # w_ref : (tn, tk)  bf16  VMEM  (PyTorch layout: rows = out features)
    # b_ref : (1, tn)   f32   VMEM
    # o_ref : (tm, tn)  f32   VMEM
    # acc_ref: (tm, tn) f32   VMEM scratch (persistent across k)
    k = pl.program_id(2)

    @pl.when(k == 0)
    def _():
        acc_ref[...] = jnp.zeros_like(acc_ref)

    # x @ W^T without transposing W: contract on Din (dim 1 of both operands).
    acc_ref[...] += jax.lax.dot_general(
        x_ref[...], w_ref[...],
        dimension_numbers=(((1,), (1,)), ((), ())),
        preferred_element_type=jnp.float32,
    )

    @pl.when(k == pl.num_programs(2) - 1)
    def _():
        acc = acc_ref[...] + b_ref[...]          # f32 bias add (broadcast rows)
        if apply_sigmoid:
            # sigmoid(z) = 1 / (1 + exp(-z)); exp + approx reciprocal -> EUP.
            acc = pl.reciprocal(1.0 + jnp.exp(-acc), approx=True)
        o_ref[...] = acc.astype(o_ref.dtype)


def logistic_regression_forward(x, weight, bias, type_):
    """x: (B, Din), weight: (Dout, Din) [PyTorch layout], bias: (Dout,)."""
    B, Din = x.shape
    Dout = weight.shape[0]
    b_p, din_p, dout_p, tm, tn, tk = _pick_tiles(B, Din, Dout)

    # Zero-pad (exact for the matmul) and cast matmul operands to bf16 so the
    # MXU runs at its bf16 rate and HBM/VMEM traffic is halved.
    x_p = jnp.pad(x, ((0, b_p - B), (0, din_p - Din))).astype(jnp.bfloat16)
    w_p = jnp.pad(weight, ((0, dout_p - Dout), (0, din_p - Din))).astype(jnp.bfloat16)
    b_p2 = jnp.pad(bias, (0, dout_p - Dout)).reshape(1, dout_p).astype(jnp.float32)

    grid = (b_p // tm, dout_p // tn, din_p // tk)
    kernel = functools.partial(_logreg_kernel, apply_sigmoid=(type_ == "NN"))

    # Scoped VMEM budget: double-buffered ins/outs + accumulator, with headroom.
    vmem_needed = (2 * (tm * tk * 2) + 2 * (tn * tk * 2) + 2 * (tn * 4)
                   + 2 * (tm * tn * 4) + (tm * tn * 4))
    vmem_limit = max(2 * vmem_needed, 16 * 1024 * 1024)  # conservative for v7x

    cost = pl.CostEstimate(
        flops=2 * b_p * din_p * dout_p,
        transcendentals=(b_p * dout_p) if type_ == "NN" else 0,
        bytes_accessed=x_p.size * 2 + w_p.size * 2 + b_p2.size * 4
        + b_p * dout_p * 4,
    )

    out = pl.pallas_call(
        kernel,
        out_shape=jax.ShapeDtypeStruct((b_p, dout_p), jnp.float32),
        grid=grid,
        in_specs=[
            pl.BlockSpec((tm, tk), lambda i, j, k: (i, k)),   # x tile
            pl.BlockSpec((tn, tk), lambda i, j, k: (j, k)),   # W tile (Dout, Din)
            pl.BlockSpec((1, tn), lambda i, j, k: (0, j)),    # bias tile
        ],
        out_specs=pl.BlockSpec((tm, tn), lambda i, j, k: (i, j)),
        scratch_shapes=[pltpu.VMEM((tm, tn), jnp.float32)],
        compiler_params=pltpu.CompilerParams(
            dimension_semantics=("parallel", "parallel", "arbitrary"),
            vmem_limit_bytes=vmem_limit,
        ),
        cost_estimate=cost,
    )(x_p, w_p, b_p2)

    # Slice off lane padding / batch padding; return in the input dtype.
    return out[:B, :Dout].astype(x.dtype)


if __name__ == "__main__":
    # Small shapes implied by the module: dim_input=32, dim_output=16, batch=8.
    B, Din, Dout = 8, 32, 16
    key = jax.random.PRNGKey(0)
    kx, kw, kb = jax.random.split(key, 3)

    # Deterministic nn.Linear-style init: U(-1/sqrt(Din), 1/sqrt(Din)).
    bound = 1.0 / (Din ** 0.5)
    weight = jax.random.uniform(kw, (Dout, Din), jnp.float32, -bound, bound)
    bias = jax.random.uniform(kb, (Dout,), jnp.float32, -bound, bound)
    x = jax.random.normal(kx, (B, Din), jnp.float32)

    # type == 'NN' -> linear followed by sigmoid (the LogisticRegression path).
    y = logistic_regression_forward(x, weight, bias, type_="NN")
    y = jax.block_until_ready(y)
    assert y.shape == (B, Dout)

    # Reference in plain JAX (same math as PyTorch forward); tolerances are
    # loosened slightly for the bf16-input / f32-accumulate matmul.
    y_ref = jax.nn.sigmoid(x @ weight.T + bias)
    assert jnp.allclose(y, y_ref, atol=2e-2, rtol=2e-2), "sigmoid path mismatch"

    # Also exercise the non-'NN' branch (pure linear).
    y_lin = jax.block_until_ready(
        logistic_regression_forward(x, weight, bias, type_="LR")
    )
    assert jnp.allclose(y_lin, x @ weight.T + bias, atol=2e-2, rtol=2e-2), \
        "linear path mismatch"

    print("KERNEL_OK")
</pallas_src>

<mosaic_0001>
module attributes {stable_mosaic.version = 11 : i64} {
  func.func @_logreg_kernel(%arg0: i32, %arg1: i32, %arg2: i32, %arg3: memref<8x128xbf16, #tpu.memory_space<vmem>>, %arg4: memref<128x128xbf16, #tpu.memory_space<vmem>>, %arg5: memref<1x128xf32, #tpu.memory_space<vmem>>, %arg6: memref<8x128xf32, #tpu.memory_space<vmem>>, %arg7: memref<8x128xf32, #tpu.memory_space<vmem>>) attributes {dimension_semantics = [#tpu.dimension_semantics<parallel>, #tpu.dimension_semantics<parallel>, #tpu.dimension_semantics<arbitrary>], iteration_bounds = array<i64: 1, 1, 1>, scalar_prefetch = 0 : i64, scratch_operands = 1 : i64, tpu.core_type = #tpu.core_type<tc>, window_params = [{transform_indices = @transform_0, window_bounds = array<i64: 8, 128>}, {transform_indices = @transform_1, window_bounds = array<i64: 128, 128>}, {transform_indices = @transform_2, window_bounds = array<i64: 1, 128>}, {transform_indices = @transform_3, window_bounds = array<i64: 8, 128>}]} {
    %c0_i32 = arith.constant 0 : i32
    %0 = arith.cmpi eq, %arg2, %c0_i32 : i32
    %1 = arith.extui %0 : i1 to i32
    %c0_i32_0 = arith.constant 0 : i32
    %2 = arith.cmpi ne, %1, %c0_i32_0 : i32
    scf.if %2 {
      %cst_10 = arith.constant 0.000000e+00 : f32
      %12 = vector.broadcast %cst_10 : f32 to vector<8x128xf32>
      %c0_11 = arith.constant 0 : index
      %c0_12 = arith.constant 0 : index
      %13 = vector.load %arg7[%c0_11, %c0_12] : memref<8x128xf32, #tpu.memory_space<vmem>>, vector<8x128xf32>
      tpu.vector_store %arg7[%c0_11, %c0_12], %12 {strides = array<i32>} : memref<8x128xf32, #tpu.memory_space<vmem>>, vector<8x128xf32>,
    } else {
    }
    %c0 = arith.constant 0 : index
    %c0_1 = arith.constant 0 : index
    %3 = vector.load %arg7[%c0, %c0_1] : memref<8x128xf32, #tpu.memory_space<vmem>>, vector<8x128xf32>
    %c0_2 = arith.constant 0 : index
    %c0_3 = arith.constant 0 : index
    %4 = vector.load %arg3[%c0_2, %c0_3] : memref<8x128xbf16, #tpu.memory_space<vmem>>, vector<8x128xbf16>
    %c0_4 = arith.constant 0 : index
    %c0_5 = arith.constant 0 : index
    %5 = vector.load %arg4[%c0_4, %c0_5] : memref<128x128xbf16, #tpu.memory_space<vmem>>, vector<128x128xbf16>
    %cst = arith.constant dense<0.000000e+00> : vector<8x128xf32>
    %6 = tpu.matmul %4, %5, %cst {dimension_numbers = #tpu.dot_dimension_numbers<[1], [1], [0], [0], [0, 0, 1, 0], [], []>} : vector<8x128xbf16>, vector<128x128xbf16>, vector<8x128xf32> -> vector<8x128xf32>
    %7 = arith.addf %3, %6 : vector<8x128xf32>
    %c0_6 = arith.constant 0 : index
    %c0_7 = arith.constant 0 : index
    %8 = vector.load %arg7[%c0_6, %c0_7] : memref<8x128xf32, #tpu.memory_space<vmem>>, vector<8x128xf32>
    tpu.vector_store %arg7[%c0_6, %c0_7], %7 {strides = array<i32>} : memref<8x128xf32, #tpu.memory_space<vmem>>, vector<8x128xf32>,
    %c0_i32_8 = arith.constant 0 : i32
    %9 = arith.cmpi eq, %arg2, %c0_i32_8 : i32
    %10 = arith.extui %9 : i1 to i32
    %c0_i32_9 = arith.constant 0 : i32
    %11 = arith.cmpi ne, %10, %c0_i32_9 : i32
    scf.if %11 {
      %c0_10 = arith.constant 0 : index
      %c0_11 = arith.constant 0 : index
      %12 = vector.load %arg7[%c0_10, %c0_11] : memref<8x128xf32, #tpu.memory_space<vmem>>, vector<8x128xf32>
      %c0_12 = arith.constant 0 : index
      %c0_13 = arith.constant 0 : index
      %13 = vector.load %arg5[%c0_12, %c0_13] : memref<1x128xf32, #tpu.memory_space<vmem>>, vector<1x128xf32>
      %14 = vector.broadcast %13 : vector<1x128xf32> to vector<8x128xf32>
      %15 = arith.addf %12, %14 : vector<8x128xf32>
      %cst_14 = arith.constant 0.000000e+00 : f32
      %16 = vector.broadcast %cst_14 : f32 to vector<8x128xf32>
      %17 = arith.subf %16, %15 : vector<8x128xf32>
      %18 = math.exp %17 : vector<8x128xf32>
      %cst_15 = arith.constant 1.000000e+00 : f32
      %19 = vector.broadcast %cst_15 : f32 to vector<8x128xf32>
      %20 = arith.addf %19, %18 : vector<8x128xf32>
      %21 = tpu.reciprocal %20 {approx = true} : vector<8x128xf32> -> vector<8x128xf32>
      %c0_16 = arith.constant 0 : index
      %c0_17 = arith.constant 0 : index
      %22 = vector.load %arg6[%c0_16, %c0_17] : memref<8x128xf32, #tpu.memory_space<vmem>>, vector<8x128xf32>
      tpu.vector_store %arg6[%c0_16, %c0_17], %21 {strides = array<i32>} : memref<8x128xf32, #tpu.memory_space<vmem>>, vector<8x128xf32>,
    } else {
    }
    return
  }
  func.func @transform_0(%arg0: i32, %arg1: i32, %arg2: i32) -> (i32, i32) {
    %c0_i32 = arith.constant 0 : i32
    return %arg0, %arg2 : i32, i32
  }
  func.func @transform_1(%arg0: i32, %arg1: i32, %arg2: i32) -> (i32, i32) {
    %c0_i32 = arith.constant 0 : i32
    return %arg1, %arg2 : i32, i32
  }
  func.func @transform_2(%arg0: i32, %arg1: i32, %arg2: i32) -> (i32, i32) {
    %c0_i32 = arith.constant 0 : i32
    %c0_i32_0 = arith.constant 0 : i32
    return %c0_i32, %arg1 : i32, i32
  }
  func.func @transform_3(%arg0: i32, %arg1: i32, %arg2: i32) -> (i32, i32) {
    %c0_i32 = arith.constant 0 : i32
    return %arg0, %arg1 : i32, i32
  }
}

</mosaic_0001>

<bundles_post_ra>
// kernel: tpu_custom_call.1
= control target key start
LH: loop header
LB: loop body
LE: loop exit
PB: predicated region body
PF: predicated region fallthrough
CT: control target
= control target key end

     0   :  { %8 = vsyncpa [#allocation4], 0  ;;  %s391_s0 = inlined_call_operand.hbm [shape: bf16[8,128], index: 0, kind: input, shape index: {}]   ;;  %s392_s1 = inlined_call_operand.hbm [shape: bf16[128,128], index: 1, kind: input, shape index: {}]   ;;  %s393_s2 = inlined_call_operand.vmem [shape: f32[1,128], index: 2, kind: input, shape index: {}]   ;;  %s394_s3 = inlined_call_operand.hbm [shape: f32[8,128], index: 3, kind: output, shape index: {}]  }
   0x1   :  { %9 = vsyncpa [#allocation7], 0 }
   0x2   :  { %10 = vsyncpa [#allocation5], 0  ;;  %s318_s12 = smov [#allocation3]   ;;  %s319_s14 = smov [#allocation6]  }
   0x3   :  { %s17_s13 = sshll.u32 %s318_s12, 4  ;;  %s26_s15 = sshll.u32 %s319_s14, 4  ;;  %s18_s13 = int_to_ptr.vmem [resolvable:$true] %s17_s13  ;;  %s345_s15 = int_to_ptr.vmem [resolvable:$true] %s26_s15 }
   0x4   :  { %s246_s18 = scalar_lea.hbm %s391_s0, 64 }
   0x5   :  { %p247_p0 = scmp.ne.s32.totalorder %s391_s0, %s246_s18  ;;  %p250_p1 = scmp.lt.u32.totalorder %s246_s18, %s391_s0 }
   0x7   :  { %p252_p2 = pnand %p250_p1, %p247_p0 }
   0x9   :  { %255 = shalt.err (!%p252_p2)
}
   0xa   :  { %s256_s23 = scalar_lea.vmem %s18_s13, 64  ;;  %p261_p4 = scmp.lt.s32.totalorder %s18_s13, %s18_s13 }
   0xb   :  { %p257_p3 = scmp.ne.s32.totalorder %s18_s13, %s256_s23  ;;  %p262_p5 = scmp.lt.s32.totalorder %s256_s23, %s256_s23 }
   0xd   :  { %p263_p6 = por %p262_p5, %p261_p4 }
   0xf   :  { %p264_p7 = pnand %p263_p6, %p257_p3 }
  0x11   :  { %267 = shalt.err (!%p264_p7)
}
  0x12   :  { %20 = dma.hbm_to_vmem [thread:$0]  %s391_s0, 64, %s18_s13, [#allocation4]  }
  0x13   :  { %s268_s28 = scalar_lea.hbm %s392_s1, 1024 }
  0x14   :  { %p269_p8 = scmp.ne.s32.totalorder %s392_s1, %s268_s28  ;;  %p272_p9 = scmp.lt.u32.totalorder %s268_s28, %s392_s1 }
  0x16   :  { %p274_p10 = pnand %p272_p9, %p269_p8 }
  0x18   :  { %277 = shalt.err (!%p274_p10)
}
  0x19   :  { %s278_s6 = scalar_lea.vmem %s345_s15, 1024  ;;  %p283_p12 = scmp.lt.s32.totalorder %s345_s15, %s345_s15 }
  0x1a   :  { %p279_p11 = scmp.ne.s32.totalorder %s345_s15, %s278_s6  ;;  %p284_p13 = scmp.lt.s32.totalorder %s278_s6, %s278_s6 }
  0x1c   :  { %p285_p0 = por %p284_p13, %p283_p12 }
  0x1e   :  { %p286_p1 = pnand %p285_p0, %p279_p11 }
  0x20   :  { %289 = shalt.err (!%p286_p1)
}
  0x21   :  { %s320_s0 = smov 64   ;;  %s321_s7 = smov 4  }
  0x22   :  { %32 = dma.hbm_to_vmem [thread:$0]  %s392_s1, 1024, %s345_s15, [#allocation7], %s320_s0, %s320_s0, %s321_s7  }
  0x23   :  { %312 = dma.done.wait [#allocation4], 64  }
  0x24   :  { %313 = vsyncadd [#allocation4], 4294967232 }
  0x25   :  { %314 = dma.done.wait [#allocation7], 1024  }
  0x26   :  { %315 = vsyncadd [#allocation7], 4294966272  ;;  %v322_v0 = vmov 0.0   ;;  %vm323_vm0 = vmmov 0   ;;  %v234_v1 = vld [vmem:[#allocation6] sm:$0xff]   ;;  %v235_v2 = vld [vmem:[#allocation6 + $0x8] sm:$0xff]  }
  0x27   :  { %207 = vmatprep.subr.bf16.mxu0 %v322_v0  ;;  %223 = vmatprep.mubr.msk.bf16.mxu0 %vm323_vm0, %v322_v0  ;;  %v236_v3 = vld [vmem:[#allocation6 + $0x10] sm:$0xff]   ;;  %v237_v4 = vld [vmem:[#allocation6 + $0x18] sm:$0xff]   ;;  %v238_v5 = vld [vmem:[#allocation6 + $0x20] sm:$0xff]   ;;  %s324_s11 = smov [#allocation8]  }
  0x28   :  { %208 = vmatpush3.bf16.xpose.msra.mxu0 %v234_v1  ;;  %v239_v6 = vld [vmem:[#allocation6 + $0x28] sm:$0xff]   ;;  %v240_v7 = vld [vmem:[#allocation6 + $0x30] sm:$0xff]   ;;  %v241_v8 = vld [vmem:[#allocation6 + $0x38] sm:$0xff]   ;;  %s179_s12 = sshll.u32 %s324_s11, 4  ;;  %s180_s12 = int_to_ptr.vmem [resolvable:$true] %s179_s12 }
  0x29   :  { %209 = vmatprep.subr.bf16.mxu0 %v322_v0  ;;  %v48_v9 = vld [vmem:[#allocation3] sm:$0xf]  ;;  %s290_s13 = scalar_lea.vmem %s180_s12, 128  ;;  %p295_p3 = scmp.lt.s32.totalorder %s180_s12, %s180_s12 }
  0x2a   :  { %v197_v10 = vld [vmem:[%s393_s2] ss:$0 sm:$0xff]  ;;  %p291_p2 = scmp.ne.s32.totalorder %s180_s12, %s290_s13  ;;  %p296_p4 = scmp.lt.s32.totalorder %s290_s13, %s290_s13 }
  0x2c   :  { %p297_p5 = por %p296_p4, %p295_p3 }
  0x2e   :  { %p298_p6 = pnand %p297_p5, %p291_p2 }
  0x30   :  { %210 = vmatpush3.bf16.xpose.msra.mxu0 %v235_v2 }
  0x31   :  { %211 = vmatprep.subr.bf16.mxu0 %v322_v0 }
  0x38   :  { %212 = vmatpush3.bf16.xpose.msra.mxu0 %v236_v3 }
  0x39   :  { %213 = vmatprep.subr.bf16.mxu0 %v322_v0 }
  0x40   :  { %214 = vmatpush3.bf16.xpose.msra.mxu0 %v237_v4 }
  0x41   :  { %215 = vmatprep.subr.bf16.mxu0 %v322_v0 }
  0x48   :  { %216 = vmatpush3.bf16.xpose.msra.mxu0 %v238_v5 }
  0x49   :  { %217 = vmatprep.subr.bf16.mxu0 %v322_v0 }
  0x50   :  { %218 = vmatpush3.bf16.xpose.msra.mxu0 %v239_v6 }
  0x51   :  { %219 = vmatprep.subr.bf16.mxu0 %v322_v0 }
  0x58   :  { %220 = vmatpush3.bf16.xpose.msra.mxu0 %v240_v7 }
  0x59   :  { %221 = vmatprep.subr.bf16.mxu0 %v322_v0 }
  0x60   :  { %222 = vmatpush3.bf16.xpose.msra.mxu0 %v241_v8 }
  0x67   :  { %224 = vmatmul.mubr.bf16.vlgmr.msra.gmra.mrb[0].mxu0 %v48_v9 }
 0x13a   :  { %v147_v11 = vpop.f32.mrb[0].mxu0 }
 0x13b   :  { %v166_v12 = vadd.f32 %v197_v10, %v147_v11  ;;  %v225_v13 = vpop.f32.mrb[1].mxu0 }
 0x13c   :  { %v150_v14 = vpop.f32.mrb[2].mxu0 }
 0x13d   :  { %v167_v15 = vsub.f32 0.0, %v166_v12  ;;  %v226_v16 = vpop.f32.mrb[3].mxu0 }
 0x13f   :  { %v168_v17 = vmul.f32 1.442695, %v167_v15 }
 0x141   :  { %242 = vpow2.f32 %v168_v17 }
 0x14b   :  { %v243_v18 = vpop.eup %242 }
 0x14c   :  { %v170_v19 = vadd.f32 1.0, %v243_v18 }
 0x14e   :  { %244 = vrcp.f32 %v170_v19 }
 0x158   :  { %v245_v20 = vpop.eup %244 }
 0x159   :  { %172 = vst [vmem:[#allocation8] sm:$0xff] %v245_v20 }
 0x15a   :  { %301 = shalt.err (!%p298_p6)
}
 0x15b   :  { %s302_s15 = scalar_lea.hbm %s394_s3, 128 }
 0x15c   :  { %p303_p7 = scmp.ne.s32.totalorder %s394_s3, %s302_s15  ;;  %p306_p8 = scmp.lt.u32.totalorder %s302_s15, %s394_s3 }
 0x15e   :  { %p308_p9 = pnand %p306_p8, %p303_p7 }
 0x160   :  { %311 = shalt.err (!%p308_p9)
}
 0x161   :  { %182 = dma.vmem_to_hbm [thread:$0]  %s180_s12, 128, %s394_s3, [#allocation5]  }
 0x162   :  { %316 = dma.done.wait [#allocation5], 128  }
 0x163   :  { %317 = vsyncadd [#allocation5], 4294967168 }
 0x164   :  { %186 = vsyncpa [#allocation4], 1 }
 0x165   :  { %187 = vsyncpa [#allocation7], 1 }
 0x166   :  { %188 = vsyncpa [#allocation5], 1 }

</bundles_post_ra>
